<compile_context>
chip_gen: v6e
topology: v6e:2x2x1
jax: 0.10.0
libtpu: 0.0.40
codegen_flags: <defaults>
</compile_context>

<pallas_src>
import functools

import jax
import jax.numpy as jnp
import numpy as np
from jax.experimental import pallas as pl
from jax.experimental.pallas import tpu as pltpu


def _round_up(x, m):
    return ((x + m - 1) // m) * m


def _dw_conv1d_kernel(x_hbm, w_ref, o_ref, buf_ref, sem, *,
                      kmax, stride, dilation, pad,
                      seq_len, tl, nt, c_tile, copy_len, front, tail):
    """One (batch, channel-tile, seq-tile) grid step of the depthwise conv.

    x_hbm  : (B, L, C) input, left in HBM (manual DMA).
    w_ref  : (Kmax, c_tile) per-channel taps (VMEM, resident across L loop).
    o_ref  : (1, tl, c_tile) output tile (VMEM, auto-pipelined).
    buf_ref: (2, ZBUF, c_tile) double-buffered input-window scratch.
    sem    : (2,) DMA semaphores.
    """
    b = pl.program_id(0)
    c = pl.program_id(1)
    l = pl.program_id(2)
    slot = l % 2
    ts = tl * stride                      # input rows advanced per L tile

    def issue(l_idx, s):
        # Wanted window start (may be < 0 or run past seq_len); the DMA source
        # start is clamped in-bounds, compute compensates via `delta` below
        # plus the zeroed halo rows.
        start_ideal = l_idx * ts - pad
        start_clamp = jnp.clip(start_ideal, 0, seq_len - copy_len)
        pltpu.make_async_copy(
            x_hbm.at[b, pl.ds(start_clamp, copy_len),
                     pl.ds(c * c_tile, c_tile)],
            buf_ref.at[s, pl.ds(front, copy_len), :],
            sem.at[s],
        ).start()

    @pl.when(l == 0)
    def _():
        # First tile of this (b, c): nothing prefetched yet -> fetch now, and
        # zero the halo rows of both slots (never touched by any DMA).
        issue(0, 0)
        zf = jnp.zeros((front, c_tile), buf_ref.dtype)
        zt = jnp.zeros((tail, c_tile), buf_ref.dtype)
        buf_ref[0, pl.ds(0, front), :] = zf
        buf_ref[1, pl.ds(0, front), :] = zf
        buf_ref[0, pl.ds(front + copy_len, tail), :] = zt
        buf_ref[1, pl.ds(front + copy_len, tail), :] = zt

    # Wait for this step's window (prefetched by the previous step or above).
    pltpu.make_async_copy(
        x_hbm.at[0, pl.ds(0, copy_len), pl.ds(0, c_tile)],
        buf_ref.at[slot, pl.ds(front, copy_len), :],
        sem.at[slot],
    ).wait()

    # Prefetch the next L tile of the same (b, c) while this one computes.
    if nt > 1:
        @pl.when(l + 1 < nt)
        def _():
            issue(l + 1, 1 - slot)

    # Shift between the wanted window start and the clamped DMA start.
    start_ideal = l * ts - pad
    start_clamp = jnp.clip(start_ideal, 0, seq_len - copy_len)
    delta = start_ideal - start_clamp     # in [-pad, dmax]
    base = front + delta                  # >= 0

    w = w_ref[...].astype(jnp.float32)    # (Kmax, c_tile), loaded once

    span = (tl - 1) * stride + 1
    acc = jnp.zeros((tl, c_tile), jnp.float32)
    for k in range(kmax):                 # Kmax is small & static -> unrolled
        xs = buf_ref[slot, pl.ds(base + k * dilation, span), :]
        if stride > 1:
            xs = jax.lax.slice_in_dim(xs, 0, span, stride, axis=0)
        acc = acc + xs.astype(jnp.float32) * w[k:k + 1, :]
    o_ref[0] = acc.astype(o_ref.dtype)


def dynamic_separable_conv1d(x, weight, kernel_size_list, *, stride=1,
                             dilation=1, active_kernel_size=None,
                             tile_l=512, tile_c=512):
    """Depthwise dynamic conv1d.  x: (B, L, C); weight: (C, 1, Kmax)."""
    kmax = max(kernel_size_list)
    if active_kernel_size is None:
        active_kernel_size = kmax          # module default: active = max
    pad = active_kernel_size // 2          # forward: padding = active // 2

    B, L, C = x.shape
    lout = (L + 2 * pad - dilation * (kmax - 1) - 1) // stride + 1
    assert lout >= 1

    # ---- tiling ----------------------------------------------------------
    tl = min(_round_up(lout, 8), _round_up(max(tile_l, 8), 8))  # sublane align
    nt = pl.cdiv(lout, tl)
    c_tile = C                                   # lane-dense channel tile
    if C % 128 == 0:
        c_tile = 128
        for cand in (512, 384, 256, 128):
            if cand <= max(tile_c, 128) and C % cand == 0:
                c_tile = cand
                break
    nc = C // c_tile

    # ---- input-window geometry ------------------------------------------
    w_in = (tl - 1) * stride + (kmax - 1) * dilation + 1   # rows per window
    copy_len = min(w_in, L)                                # rows DMA'd/window
    front = _round_up(max(pad, 1), 8)                      # zeroed left halo
    tail = max(pad, 1)                                     # zeroed right halo
    # worst-case clamp shift of the last tile (keeps every read in-bounds)
    dmax = max(0, (nt - 1) * tl * stride - pad - (L - copy_len))
    zbuf = _round_up(front + max(w_in + dmax, copy_len + tail), 8)

    w = jnp.transpose(weight[:, 0, :], (1, 0))             # (Kmax, C)

    kernel = functools.partial(
        _dw_conv1d_kernel, kmax=kmax, stride=stride, dilation=dilation,
        pad=pad, seq_len=L, tl=tl, nt=nt, c_tile=c_tile,
        copy_len=copy_len, front=front, tail=tail)

    return pl.pallas_call(
        kernel,
        out_shape=jax.ShapeDtypeStruct((B, lout, C), x.dtype),
        grid_spec=pltpu.PrefetchScalarGridSpec(
            num_scalar_prefetch=0,
            grid=(B, nc, nt),
            in_specs=[
                pl.BlockSpec(memory_space=pl.ANY),                    # x (HBM)
                pl.BlockSpec((kmax, c_tile), lambda b, c, l: (0, c)),  # taps
            ],
            out_specs=pl.BlockSpec((1, tl, c_tile), lambda b, c, l: (b, l, c)),
            scratch_shapes=[
                pltpu.VMEM((2, zbuf, c_tile), x.dtype),
                pltpu.SemaphoreType.DMA((2,)),
            ],
        ),
        compiler_params=pltpu.CompilerParams(
            dimension_semantics=("parallel", "parallel", "arbitrary")),
    )(x, w)


def _reference_conv1d(x, weight, *, stride, pad, dilation):
    """Pure-JAX reference mirroring F.conv1d(groups=C) on (B, L, C) input."""
    B, L, C = x.shape
    x_ncl = jnp.transpose(x, (0, 2, 1))  # (B, C, L)
    y = jax.lax.conv_general_dilated(
        x_ncl, weight,
        window_strides=(stride,), padding=((pad, pad),),
        rhs_dilation=(dilation,), feature_group_count=C,
        dimension_numbers=("NCH", "OIH", "NCH"))
    return jnp.transpose(y, (0, 2, 1))   # (B, L_out, C)


def _check(x, weight, kernel_size_list, *, stride=1, dilation=1, **tile_kw):
    kmax = max(kernel_size_list)
    pad = kmax // 2
    y = dynamic_separable_conv1d(x, weight, kernel_size_list,
                                 stride=stride, dilation=dilation, **tile_kw)
    jax.block_until_ready(y)
    ref = _reference_conv1d(x, weight, stride=stride, pad=pad,
                            dilation=dilation)
    np.testing.assert_allclose(np.asarray(y), np.asarray(ref),
                               rtol=1e-5, atol=1e-5)


if __name__ == "__main__":
    key = jax.random.PRNGKey(0)
    kx, kw1, kw2 = jax.random.split(key, 3)

    # Main config: lane-dense C (=128), modest sequence length.
    B, L, C = 2, 96, 128
    kernel_size_list = [3, 5, 7]
    kmax = max(kernel_size_list)
    x = jax.random.normal(kx, (B, L, C), dtype=jnp.float32)

    # Weight initialized exactly as the module's __init__ (depthwise path):
    # zeros with a 1 at the center tap of every channel (identity kernel).
    w_init = jnp.zeros((C, 1, kmax), dtype=jnp.float32)
    w_init = w_init.at[:, 0, kmax // 2].set(1.0)
    w_rand = jax.random.normal(kw1, (C, 1, kmax), dtype=jnp.float32)

    # 1) module-default (identity) taps, default single L tile.
    _check(x, w_init, kernel_size_list)
    # 2) random taps, small L tiles -> exercises the halo handling and the
    #    double-buffered manual DMA prefetch chain over several seq tiles.
    _check(x, w_rand, kernel_size_list, tile_l=32)
    # 3) sequence length that does not divide the tile -> partial last output
    #    tile + right-edge window clamping.
    _check(x[:, :50, :], w_rand, kernel_size_list, tile_l=32)
    # 4) channels not a multiple of 128 (full-C lane tile path).
    C2, ks2 = 32, [3, 5]
    x2 = jax.random.normal(kw2, (2, 24, C2), dtype=jnp.float32)
    w2 = jax.random.normal(kw1, (C2, 1, max(ks2)), dtype=jnp.float32)
    _check(x2, w2, ks2)

    print("KERNEL_OK")
</pallas_src>

<mosaic_0001>
module attributes {stable_mosaic.version = 11 : i64} {
  func.func @_dw_conv1d_kernel(%arg0: i32, %arg1: i32, %arg2: i32, %arg3: memref<2x96x128xf32, #tpu.memory_space<any>>, %arg4: memref<7x128xf32, #tpu.memory_space<vmem>>, %arg5: memref<1x96x128xf32, #tpu.memory_space<vmem>>, %arg6: memref<2x112x128xf32, #tpu.memory_space<vmem>>, %arg7: memref<2x!tpu.dma_semaphore, #tpu.memory_space<semaphore_mem>>) attributes {dimension_semantics = [#tpu.dimension_semantics<parallel>, #tpu.dimension_semantics<parallel>, #tpu.dimension_semantics<arbitrary>], iteration_bounds = array<i64: 2, 1, 1>, scalar_prefetch = 0 : i64, scratch_operands = 2 : i64, tpu.core_type = #tpu.core_type<tc>, window_params = [{}, {transform_indices = @transform_1, window_bounds = array<i64: 7, 128>}, {transform_indices = @transform_2, window_bounds = array<i64: 1, 96, 128>}]} {
    %c2_i32 = arith.constant 2 : i32
    %c0_i32 = arith.constant 0 : i32
    %0 = arith.cmpi eq, %c2_i32, %c0_i32 : i32
    %c1_i32 = arith.constant 1 : i32
    %1 = arith.select %0, %c1_i32, %c2_i32 : i32
    %2 = arith.remsi %arg2, %1 : i32
    %c0_i32_0 = arith.constant 0 : i32
    %3 = arith.cmpi ne, %2, %c0_i32_0 : i32
    %c0_i32_1 = arith.constant 0 : i32
    %4 = arith.cmpi slt, %2, %c0_i32_1 : i32
    %c0_i32_2 = arith.constant 0 : i32
    %5 = arith.cmpi slt, %1, %c0_i32_2 : i32
    %6 = arith.xori %4, %5 : i1
    %7 = arith.andi %6, %3 : i1
    %8 = arith.addi %2, %1 : i32
    %9 = arith.select %7, %8, %2 : i32
    %c0_i32_3 = arith.constant 0 : i32
    %10 = arith.cmpi eq, %arg2, %c0_i32_3 : i32
    %11 = arith.extui %10 : i1 to i32
    %c0_i32_4 = arith.constant 0 : i32
    %12 = arith.cmpi ne, %11, %c0_i32_4 : i32
    scf.if %12 {
      %c-3_i32 = arith.constant -3 : i32
      %c0_i32_27 = arith.constant 0 : i32
      %c0_i32_28 = arith.constant 0 : i32
      %93 = arith.maxsi %c0_i32_27, %c-3_i32 : i32
      %94 = arith.minsi %c0_i32_28, %93 : i32
      %c128_i32 = arith.constant 128 : i32
      %95 = arith.muli %arg1, %c128_i32 : i32
      %c0_i32_29 = arith.constant 0 : i32
      %c0_i32_30 = arith.constant 0 : i32
      %96 = tpu.memref_slice %arg3[%arg0, %94, %95] : memref<2x96x128xf32, #tpu.memory_space<any>> -> memref<1x96x128xf32, #tpu.memory_space<any>>
      %97 = tpu.memref_squeeze %96 : memref<1x96x128xf32, #tpu.memory_space<any>> -> memref<96x128xf32, #tpu.memory_space<any>>
      %c8_i32_31 = arith.constant 8 : i32
      %c0_i32_32 = arith.constant 0 : i32
      %98 = tpu.memref_slice %arg6[%c0_i32_29, %c8_i32_31, %c0_i32_32] : memref<2x112x128xf32, #tpu.memory_space<vmem>> -> memref<1x96x128xf32, #tpu.memory_space<vmem>>
      %99 = tpu.memref_squeeze %98 : memref<1x96x128xf32, #tpu.memory_space<vmem>> -> memref<96x128xf32, #tpu.memory_space<vmem>>
      %100 = tpu.memref_slice %arg7[%c0_i32_30] : memref<2x!tpu.dma_semaphore, #tpu.memory_space<semaphore_mem>> -> memref<1x!tpu.dma_semaphore, #tpu.memory_space<semaphore_mem>>
      %101 = tpu.memref_squeeze %100 : memref<1x!tpu.dma_semaphore, #tpu.memory_space<semaphore_mem>> -> memref<!tpu.dma_semaphore, #tpu.memory_space<semaphore_mem>>
      tpu.enqueue_dma source(%97 : memref<96x128xf32, #tpu.memory_space<any>>) target(%99 : memref<96x128xf32, #tpu.memory_space<vmem>>) target_semaphore(%101 : memref<!tpu.dma_semaphore, #tpu.memory_space<semaphore_mem>>)
      %cst_33 = arith.constant 0.000000e+00 : f32
      %102 = vector.broadcast %cst_33 : f32 to vector<8x128xf32>
      %cst_34 = arith.constant 0.000000e+00 : f32
      %103 = vector.broadcast %cst_34 : f32 to vector<3x128xf32>
      %c0_35 = arith.constant 0 : index
      %c0_36 = arith.constant 0 : index
      %c0_37 = arith.constant 0 : index
      %104 = vector.load %arg6[%c0_35, %c0_36, %c0_37] : memref<2x112x128xf32, #tpu.memory_space<vmem>>, vector<1x8x128xf32>
      %105 = vector.shape_cast %104 : vector<1x8x128xf32> to vector<8x128xf32>
      %106 = vector.shape_cast %102 : vector<8x128xf32> to vector<1x8x128xf32>
      tpu.vector_store %arg6[%c0_35, %c0_36, %c0_37], %106 {strides = array<i32>} : memref<2x112x128xf32, #tpu.memory_space<vmem>>, vector<1x8x128xf32>,
      %c1 = arith.constant 1 : index
      %c0_38 = arith.constant 0 : index
      %c0_39 = arith.constant 0 : index
      %107 = vector.load %arg6[%c1, %c0_38, %c0_39] : memref<2x112x128xf32, #tpu.memory_space<vmem>>, vector<1x8x128xf32>
      %108 = vector.shape_cast %107 : vector<1x8x128xf32> to vector<8x128xf32>
      %109 = vector.shape_cast %102 : vector<8x128xf32> to vector<1x8x128xf32>
      tpu.vector_store %arg6[%c1, %c0_38, %c0_39], %109 {strides = array<i32>} : memref<2x112x128xf32, #tpu.memory_space<vmem>>, vector<1x8x128xf32>,
      %c0_40 = arith.constant 0 : index
      %c104 = arith.constant 104 : index
      %c0_41 = arith.constant 0 : index
      %110 = vector.load %arg6[%c0_40, %c104, %c0_41] : memref<2x112x128xf32, #tpu.memory_space<vmem>>, vector<1x3x128xf32>
      %111 = vector.shape_cast %110 : vector<1x3x128xf32> to vector<3x128xf32>
      %112 = vector.shape_cast %103 : vector<3x128xf32> to vector<1x3x128xf32>
      tpu.vector_store %arg6[%c0_40, %c104, %c0_41], %112 {strides = array<i32>} : memref<2x112x128xf32, #tpu.memory_space<vmem>>, vector<1x3x128xf32>,
      %c1_42 = arith.constant 1 : index
      %c104_43 = arith.constant 104 : index
      %c0_44 = arith.constant 0 : index
      %113 = vector.load %arg6[%c1_42, %c104_43, %c0_44] : memref<2x112x128xf32, #tpu.memory_space<vmem>>, vector<1x3x128xf32>
      %114 = vector.shape_cast %113 : vector<1x3x128xf32> to vector<3x128xf32>
      %115 = vector.shape_cast %103 : vector<3x128xf32> to vector<1x3x128xf32>
      tpu.vector_store %arg6[%c1_42, %c104_43, %c0_44], %115 {strides = array<i32>} : memref<2x112x128xf32, #tpu.memory_space<vmem>>, vector<1x3x128xf32>,
    } else {
    }
    %c0_i32_5 = arith.constant 0 : i32
    %c0_i32_6 = arith.constant 0 : i32
    %c0_i32_7 = arith.constant 0 : i32
    %13 = tpu.memref_slice %arg3[%c0_i32_5, %c0_i32_6, %c0_i32_7] : memref<2x96x128xf32, #tpu.memory_space<any>> -> memref<1x96x128xf32, #tpu.memory_space<any>>
    %14 = tpu.memref_squeeze %13 : memref<1x96x128xf32, #tpu.memory_space<any>> -> memref<96x128xf32, #tpu.memory_space<any>>
    %c8_i32 = arith.constant 8 : i32
    %c0_i32_8 = arith.constant 0 : i32
    %15 = tpu.memref_slice %arg6[%9, %c8_i32, %c0_i32_8] : memref<2x112x128xf32, #tpu.memory_space<vmem>> -> memref<1x96x128xf32, #tpu.memory_space<vmem>>
    %16 = tpu.memref_squeeze %15 : memref<1x96x128xf32, #tpu.memory_space<vmem>> -> memref<96x128xf32, #tpu.memory_space<vmem>>
    %17 = tpu.memref_slice %arg7[%9] : memref<2x!tpu.dma_semaphore, #tpu.memory_space<semaphore_mem>> -> memref<1x!tpu.dma_semaphore, #tpu.memory_space<semaphore_mem>>
    %18 = tpu.memref_squeeze %17 : memref<1x!tpu.dma_semaphore, #tpu.memory_space<semaphore_mem>> -> memref<!tpu.dma_semaphore, #tpu.memory_space<semaphore_mem>>
    tpu.wait_dma2 semaphore(%18 : memref<!tpu.dma_semaphore, #tpu.memory_space<semaphore_mem>>) src(%14 : memref<96x128xf32, #tpu.memory_space<any>>) dst(%16 : memref<96x128xf32, #tpu.memory_space<vmem>>)
    %c96_i32 = arith.constant 96 : i32
    %19 = arith.muli %arg2, %c96_i32 : i32
    %c3_i32 = arith.constant 3 : i32
    %20 = arith.subi %19, %c3_i32 : i32
    %c0_i32_9 = arith.constant 0 : i32
    %c0_i32_10 = arith.constant 0 : i32
    %21 = arith.maxsi %c0_i32_9, %20 : i32
    %22 = arith.minsi %c0_i32_10, %21 : i32
    %23 = arith.subi %20, %22 : i32
    %c8_i32_11 = arith.constant 8 : i32
    %24 = arith.addi %c8_i32_11, %23 : i32
    %c0 = arith.constant 0 : index
    %c0_12 = arith.constant 0 : index
    %25 = vector.load %arg4[%c0, %c0_12] : memref<7x128xf32, #tpu.memory_space<vmem>>, vector<7x128xf32>
    %cst = arith.constant 0.000000e+00 : f32
    %26 = vector.broadcast %cst : f32 to vector<96x128xf32>
    %c0_i32_13 = arith.constant 0 : i32
    %27 = arith.addi %24, %c0_i32_13 : i32
    %28 = arith.index_cast %9 : i32 to index
    %29 = arith.index_cast %27 : i32 to index
    %c0_14 = arith.constant 0 : index
    %30 = vector.load %arg6[%28, %29, %c0_14] : memref<2x112x128xf32, #tpu.memory_space<vmem>>, vector<1x96x128xf32>
    %31 = vector.shape_cast %30 : vector<1x96x128xf32> to vector<96x128xf32>
    %32 = vector.extract_strided_slice %25 {offsets = [0, 0], sizes = [1, 128], strides = [1, 1]} : vector<7x128xf32> to vector<1x128xf32>
    %33 = vector.broadcast %32 : vector<1x128xf32> to vector<96x128xf32>
    %34 = arith.mulf %31, %33 : vector<96x128xf32>
    %35 = arith.addf %26, %34 : vector<96x128xf32>
    %c1_i32_15 = arith.constant 1 : i32
    %36 = arith.addi %24, %c1_i32_15 : i32
    %37 = arith.index_cast %9 : i32 to index
    %38 = arith.index_cast %36 : i32 to index
    %c0_16 = arith.constant 0 : index
    %39 = vector.load %arg6[%37, %38, %c0_16] : memref<2x112x128xf32, #tpu.memory_space<vmem>>, vector<1x96x128xf32>
    %40 = vector.shape_cast %39 : vector<1x96x128xf32> to vector<96x128xf32>
    %41 = vector.extract_strided_slice %25 {offsets = [1, 0], sizes = [1, 128], strides = [1, 1]} : vector<7x128xf32> to vector<1x128xf32>
    %42 = vector.broadcast %41 : vector<1x128xf32> to vector<96x128xf32>
    %43 = arith.mulf %40, %42 : vector<96x128xf32>
    %44 = arith.addf %35, %43 : vector<96x128xf32>
    %c2_i32_17 = arith.constant 2 : i32
    %45 = arith.addi %24, %c2_i32_17 : i32
    %46 = arith.index_cast %9 : i32 to index
    %47 = arith.index_cast %45 : i32 to index
    %c0_18 = arith.constant 0 : index
    %48 = vector.load %arg6[%46, %47, %c0_18] : memref<2x112x128xf32, #tpu.memory_space<vmem>>, vector<1x96x128xf32>
    %49 = vector.shape_cast %48 : vector<1x96x128xf32> to vector<96x128xf32>
    %50 = vector.extract_strided_slice %25 {offsets = [2, 0], sizes = [1, 128], strides = [1, 1]} : vector<7x128xf32> to vector<1x128xf32>
    %51 = vector.broadcast %50 : vector<1x128xf32> to vector<96x128xf32>
    %52 = arith.mulf %49, %51 : vector<96x128xf32>
    %53 = arith.addf %44, %52 : vector<96x128xf32>
    %c3_i32_19 = arith.constant 3 : i32
    %54 = arith.addi %24, %c3_i32_19 : i32
    %55 = arith.index_cast %9 : i32 to index
    %56 = arith.index_cast %54 : i32 to index
    %c0_20 = arith.constant 0 : index
    %57 = vector.load %arg6[%55, %56, %c0_20] : memref<2x112x128xf32, #tpu.memory_space<vmem>>, vector<1x96x128xf32>
    %58 = vector.shape_cast %57 : vector<1x96x128xf32> to vector<96x128xf32>
    %59 = vector.extract_strided_slice %25 {offsets = [3, 0], sizes = [1, 128], strides = [1, 1]} : vector<7x128xf32> to vector<1x128xf32>
    %60 = vector.broadcast %59 : vector<1x128xf32> to vector<96x128xf32>
    %61 = arith.mulf %58, %60 : vector<96x128xf32>
    %62 = arith.addf %53, %61 : vector<96x128xf32>
    %c4_i32 = arith.constant 4 : i32
    %63 = arith.addi %24, %c4_i32 : i32
    %64 = arith.index_cast %9 : i32 to index
    %65 = arith.index_cast %63 : i32 to index
    %c0_21 = arith.constant 0 : index
    %66 = vector.load %arg6[%64, %65, %c0_21] : memref<2x112x128xf32, #tpu.memory_space<vmem>>, vector<1x96x128xf32>
    %67 = vector.shape_cast %66 : vector<1x96x128xf32> to vector<96x128xf32>
    %68 = vector.extract_strided_slice %25 {offsets = [4, 0], sizes = [1, 128], strides = [1, 1]} : vector<7x128xf32> to vector<1x128xf32>
    %69 = vector.broadcast %68 : vector<1x128xf32> to vector<96x128xf32>
    %70 = arith.mulf %67, %69 : vector<96x128xf32>
    %71 = arith.addf %62, %70 : vector<96x128xf32>
    %c5_i32 = arith.constant 5 : i32
    %72 = arith.addi %24, %c5_i32 : i32
    %73 = arith.index_cast %9 : i32 to index
    %74 = arith.index_cast %72 : i32 to index
    %c0_22 = arith.constant 0 : index
    %75 = vector.load %arg6[%73, %74, %c0_22] : memref<2x112x128xf32, #tpu.memory_space<vmem>>, vector<1x96x128xf32>
    %76 = vector.shape_cast %75 : vector<1x96x128xf32> to vector<96x128xf32>
    %77 = vector.extract_strided_slice %25 {offsets = [5, 0], sizes = [1, 128], strides = [1, 1]} : vector<7x128xf32> to vector<1x128xf32>
    %78 = vector.broadcast %77 : vector<1x128xf32> to vector<96x128xf32>
    %79 = arith.mulf %76, %78 : vector<96x128xf32>
    %80 = arith.addf %71, %79 : vector<96x128xf32>
    %c6_i32 = arith.constant 6 : i32
    %81 = arith.addi %24, %c6_i32 : i32
    %82 = arith.index_cast %9 : i32 to index
    %83 = arith.index_cast %81 : i32 to index
    %c0_23 = arith.constant 0 : index
    %84 = vector.load %arg6[%82, %83, %c0_23] : memref<2x112x128xf32, #tpu.memory_space<vmem>>, vector<1x96x128xf32>
    %85 = vector.shape_cast %84 : vector<1x96x128xf32> to vector<96x128xf32>
    %86 = vector.extract_strided_slice %25 {offsets = [6, 0], sizes = [1, 128], strides = [1, 1]} : vector<7x128xf32> to vector<1x128xf32>
    %87 = vector.broadcast %86 : vector<1x128xf32> to vector<96x128xf32>
    %88 = arith.mulf %85, %87 : vector<96x128xf32>
    %89 = arith.addf %80, %88 : vector<96x128xf32>
    %c0_24 = arith.constant 0 : index
    %c0_25 = arith.constant 0 : index
    %c0_26 = arith.constant 0 : index
    %90 = vector.load %arg5[%c0_24, %c0_25, %c0_26] : memref<1x96x128xf32, #tpu.memory_space<vmem>>, vector<1x96x128xf32>
    %91 = vector.shape_cast %90 : vector<1x96x128xf32> to vector<96x128xf32>
    %92 = vector.shape_cast %89 : vector<96x128xf32> to vector<1x96x128xf32>
    tpu.vector_store %arg5[%c0_24, %c0_25, %c0_26], %92 {strides = array<i32>} : memref<1x96x128xf32, #tpu.memory_space<vmem>>, vector<1x96x128xf32>,
    return
  }
  func.func @transform_1(%arg0: i32, %arg1: i32, %arg2: i32) -> (i32, i32) {
    %c0_i32 = arith.constant 0 : i32
    %c0_i32_0 = arith.constant 0 : i32
    return %c0_i32, %arg1 : i32, i32
  }
  func.func @transform_2(%arg0: i32, %arg1: i32, %arg2: i32) -> (i32, i32, i32) {
    %c0_i32 = arith.constant 0 : i32
    return %arg0, %arg2, %arg1 : i32, i32, i32
  }
}

</mosaic_0001>

<bundles_post_ra>
// kernel: tpu_custom_call.1
= control target key start
LH: loop header
LB: loop body
LE: loop exit
PB: predicated region body
PF: predicated region fallthrough
CT: control target
= control target key end

     0   :  { %7 = vsyncpa [#allocation5], 0  ;;  %s1238_s0 = inlined_call_operand.hbm [shape: f32[2,96,128], index: 0, kind: input, shape index: {}]   ;;  %s1239_s1 = inlined_call_operand.hbm [shape: f32[7,128], index: 1, kind: input, shape index: {}]   ;;  %s1240_s2 = inlined_call_operand.hbm [shape: f32[2,96,128], index: 2, kind: output, shape index: {}]  }
   0x1   :  { %8 = vsyncpa [#allocation6], 0 }
   0x2   :  { %10 = vsyncpa [#allocation6 + $0x1], 0  ;;  %s978_s9 = smov 0   ;;  %s980_s10 = smov 0  }
   0x3   :  { %s982_s11 = smov 0   ;;  %s984_s12 = smov 0  }
   0x4   :  { %s986_s13 = smov 0   ;;  %s988_s14 = smov 0  }
   0x5 LB: > { %s648_s15 = sadd.s32 4294967295, %s954_s14   ;;  %s649_s16 = sadd.s32 4294967294, %s954_s14   ;;  %s954_s14 = sphi %s988_s14, %s16_s14   ;;  %s950_s13 = sphi %s986_s13, %s1249_s13   ;;  %s946_s12 = sphi %s984_s12, %s1248_s12   ;;  %s942_s11 = sphi %s982_s11, %s1247_s11   ;;  %s938_s10 = sphi %s980_s10, %s1246_s10   ;;  %s934_s9 = sphi %s978_s9, %s1245_s9  }
   0x6   : > { %s35_s17 = sadd.s32 1, %s950_s13  ;;  %s72_s18 = sadd.s32 1, %s942_s11 }
   0x7   : > { %p37_p0 = scmp.ge.s32.totalorder %s35_s17, 2  ;;  %p82_p1 = scmp.ne.s32.totalorder %s942_s11, %s938_s10 }
   0x8   : > { %p83_p2 = scmp.eq.s32.totalorder %s648_s15, 1  ;;  %p88_p3 = scmp.ne.s32.totalorder %s938_s10, %s934_s9 }
   0x9   : > { %s1251_s17 = smov (%p37_p0, %s35_s17), 0  ;;  %p89_p5 = scmp.eq.s32.totalorder %s649_s16, 1 }
   0xa   : > { %p1018_p4 = por %p83_p2, %p82_p1  ;;  %s65_s20 = ssub.s32 %s950_s13, %s1251_s17 }
   0xb   : > { %p650_p6 = scmp.ge.s32.totalorder %s954_s14, 1  ;;  %p70_p7 = scmp.eq.s32.totalorder %s65_s20, 0 }
   0xc   : > { %p1025_p8 = por %p89_p5, %p88_p3  ;;  %p96_p9 = scmp.lt.s32.totalorder %s954_s14, 3 }
   0xd   : > { %s1031_s22 = scalar_select %p70_p7, %s942_s11, %s72_s18  }
   0xe   : > { %p1033_p10 = pnand %p650_p6, %p96_p9  ;;  %p1037_p11 = scmp.eq.s32.totalorder %s648_s15, 0 }
   0xf   : > { %s956_s25 = smov [#allocation4]  }
  0x10   : > { %p760_p12 = pneg %p1033_p10  ;;  %s111_s26 = sshll.u32 %s956_s25, 4  ;;  %s112_s26 = int_to_ptr.vmem [resolvable:$true] %s111_s26 }
  0x11   : > { %s835_s27 = scalar_lea.vmem %s112_s26, 128  ;;  %p843_p5 = scmp.lt.s32.totalorder %s112_s26, %s112_s26 }
  0x12   : > { %p761_p13 = pnand %p1037_p11, %p760_p12  ;;  %p836_p1 = scmp.ne.s32.totalorder %s112_s26, %s835_s27 }
  0x13   : > { %p844_p6 = scmp.lt.s32.totalorder %s835_s27, %s835_s27 }
  0x14   : > { %p826_p0 = pneg %p761_p13 }
  0x15   : > { %p845_p7 = por %p844_p6, %p843_p5 }
  0x16   : > { %p838_p2 = pnand %p836_p1, %p826_p0 }
  0x18   : > { %p839_p3 = pneg %p838_p2 }
  0x1a   : > { %p846_p9 = pnand %p845_p7, %p839_p3 }
  0x1c   : > { %849 = shalt.err (!%p846_p9)
}
  0x1d   : > { %763 = dma.hbm_to_vmem [thread:$0]  (!%p761_p13), %s1239_s1, 128, %s112_s26, [#allocation5]  }
  0x1e   : > { %124 = sbr.rel (%p1033_p10) target bundleno = 129 (0x81), region = 24 }
  0x23   : > { %923 = dma.done.wait (%p1037_p11), [#allocation5], 128  }
  0x24   : > { %925 = vsyncadd (%p1037_p11), [#allocation5], 4294967168  ;;  %s136_s30 = sand.u32 1, %s938_s10   ;;  %s751_s3 = smul.u32 1536, %s946_s12 }
  0x25   : > { %s752_s4 = smul.u32 96, %s136_s30  ;;  %s957_s8 = smov [#allocation2 + $0x8]  }
  0x26   : > { %s162_s7 = scalar_lea.hbm %s1238_s0, %s751_s3  ;;  %s171_s15 = sshll.u32 %s957_s8, 4  ;;  %s172_s15 = int_to_ptr.vmem [resolvable:$true] %s171_s15 }
  0x27   : > { %s850_s16 = scalar_lea.hbm %s162_s7, 1536  ;;  %s852_s23 = scalar_lea.hbm %s1238_s0, 3072 }
  0x28   : > { %p851_p10 = scmp.ne.s32.totalorder %s162_s7, %s850_s16  ;;  %p853_p11 = scmp.lt.s32.totalorder %s162_s7, %s1238_s0 }
  0x29   : > { %p854_p12 = scmp.lt.s32.totalorder %s852_s23, %s850_s16 }
  0x2b   : > { %p855_p13 = por %p854_p12, %p853_p11 }
  0x2d   : > { %p856_p0 = pnand %p855_p13, %p851_p10 }
  0x2f   : > { %859 = shalt.err (!%p856_p0)  }
  0x30   : > { %s860_s26 = scalar_lea.vmem %s172_s15, 1536  ;;  %s958_s27 = smov [#allocation2]  }
  0x31   : > { %p861_p1 = scmp.ne.s32.totalorder %s172_s15, %s860_s26  ;;  %s862_s28 = sshll.u32 %s958_s27, 4  ;;  %s863_s28 = int_to_ptr.vmem [resolvable:$false] %s862_s28 }
  0x32   : > { %s864_s29 = scalar_lea.vmem %s863_s28, 3584  ;;  %p865_p2 = scmp.lt.s32.totalorder %s172_s15, %s863_s28 }
  0x33   : > { %p866_p3 = scmp.lt.s32.totalorder %s864_s29, %s860_s26 }
  0x35   : > { %p867_p5 = por %p866_p3, %p865_p2 }
  0x37   : > { %p868_p6 = pnand %p867_p5, %p861_p1 }
  0x39   : > { %871 = shalt.err (!%p868_p6)  }
  0x3a   : > { %174 = dma.hbm_to_vmem [thread:$0]  %s162_s7, 1536, %s172_s15, [#allocation3]  ;;  %v959_v0 = vmov 0.0  }
  0x3b   : > { %175 = vst [vmem:[#allocation2] sm:$0xff] %v959_v0  ;;  %178 = vst [vmem:[#allocation2 + $0x68] sm:$0x7] %v959_v0  ;;  %s1069_s5 = scalar_lea.vmem [#allocation7], %s752_s4 }
  0x3c   : > { %926 = dma.done.wait [#allocation3], 1536 }
  0x3d   : > { %927 = vsyncadd [#allocation3], 4294965760  ;;  %v208_v1 = vlaneseq  ;;  %v192_v10 = vld [vmem:[#allocation4] sm:$0x7f]  ;;  %v695_v17 = vld [vmem:[#allocation2 + $0x8] sm:$0xff]  ;;  %s523_s4 = sshll.u32 %s1069_s5, 4  ;;  %s1186_s8 = scalar_lea.hbm %s1240_s2, %s751_s3  ;;  %s1188_s4 = int_to_ptr.vmem [resolvable:$true] %s523_s4 }
  0x3e   : > { %v708_v19 = vld [vmem:[#allocation2 + $0x9] sm:$0xff]  ;;  %v709_v34 = vld [vmem:[#allocation2 + $0x11] sm:$0xff]  ;;  %v710_v49 = vld [vmem:[#allocation2 + $0x19] sm:$0xff]  ;;  %s1193_s15 = scalar_lea.sflag [#allocation6], %s136_s30  ;;  %s872_s16 = scalar_lea.vmem %s1188_s4, 1536 }
  0x3f   : > { %v209_v2 = vshrl.u32 %v208_v1, 7  ;;  %v721_v21 = vld [vmem:[#allocation2 + $0xa] sm:$0xff]  ;;  %v722_v35 = vld [vmem:[#allocation2 + $0x12] sm:$0xff]  ;;  %v723_v54 = vld [vmem:[#allocation2 + $0x1a] sm:$0xff]  ;;  %p873_p7 = scmp.ne.s32.totalorder %s1188_s4, %s872_s16  ;;  %s960_s12 = smov [#allocation7]  }
  0x40   : > { %v734_v23 = vld [vmem:[#allocation2 + $0xb] sm:$0xff]  ;;  %v735_v36 = vld [vmem:[#allocation2 + $0x13] sm:$0xff]  ;;  %v659_v55 = vld [vmem:[#allocation2 + $0x1d] sm:$0xff]  ;;  %s876_s18 = sshll.u32 %s960_s12, 4  ;;  %s877_s18 = int_to_ptr.vmem [resolvable:$false] %s876_s18 }
  0x41   : > { %v210_v3 = vsub.s32 0, %v209_v2  ;;  %v253_v4 = vsub.s32 1, %v209_v2  ;;  %v296_v5 = vsub.s32 2, %v209_v2  ;;  %v339_v6 = vsub.s32 3, %v209_v2  ;;  %v657_v25 = vld [vmem:[#allocation2 + $0xd] sm:$0xff]  ;;  %v658_v41 = vld [vmem:[#allocation2 + $0x15] sm:$0xff]  ;;  %p874_p9 = pnand %p873_p7, %p1018_p4  ;;  %p879_p11 = scmp.lt.s32.totalorder %s1188_s4, %s877_s18 }
  0x42   : > { %v382_v7 = vsub.s32 4, %v209_v2  ;;  %v425_v8 = vsub.s32 5, %v209_v2  ;;  %v468_v9 = vsub.s32 6, %v209_v2  ;;  %v656_v11 = vld [vmem:[#allocation2 + $0x5] sm:$0xff]  ;;  %v670_v29 = vld [vmem:[#allocation2 + $0xe] sm:$0xff]  ;;  %v671_v42 = vld [vmem:[#allocation2 + $0x16] sm:$0xff] }
  0x43   : > { %v669_v12 = vld [vmem:[#allocation2 + $0x6] sm:$0xff]  ;;  %v1071_v13 = vrot.slane %v192_v10, %v210_v3  ;;  %v1073_v14 = vrot.slane %v192_v10, %v253_v4  ;;  %v1075_v16 = vrot.slane %v192_v10, %v296_v5  ;;  %v1077_v18 = vrot.slane %v192_v10, %v339_v6  ;;  %v683_v30 = vld [vmem:[#allocation2 + $0xf] sm:$0xff]  ;;  %v684_v43 = vld [vmem:[#allocation2 + $0x17] sm:$0xff]  ;;  %p875_p10 = pneg %p874_p9  ;;  %s878_s3 = scalar_lea.vmem %s877_s18, 3072 }
  0x44   : > { %v682_v15 = vld [vmem:[#allocation2 + $0x7] sm:$0xff]  ;;  %v1079_v20 = vrot.slane %v192_v10, %v382_v7  ;;  %v1081_v22 = vrot.slane %v192_v10, %v425_v8  ;;  %v1083_v24 = vrot.slane %v192_v10, %v468_v9  ;;  %v696_v31 = vld [vmem:[#allocation2 + $0x10] sm:$0xff]  ;;  %v697_v48 = vld [vmem:[#allocation2 + $0x18] sm:$0xff]  ;;  %p880_p12 = scmp.lt.s32.totalorder %s878_s3, %s872_s16 }
  0x45   : > { %v212_v26 = vmul.f32 %v656_v11, %v1071_v13  ;;  %v255_v27 = vmul.f32 %v669_v12, %v1073_v14  ;;  %v298_v28 = vmul.f32 %v682_v15, %v1075_v16  ;;  %v341_v32 = vmul.f32 %v695_v17, %v1077_v18  ;;  %v672_v56 = vld [vmem:[#allocation2 + $0x1e] sm:$0xff]  ;;  %v673_v9 = vld [vmem:[#allocation2 + $0x26] sm:$0xff] }
  0x46   : > { %v213_v33 = vmul.f32 %v657_v25, %v1071_v13  ;;  %v384_v38 = vmul.f32 %v708_v19, %v1079_v20  ;;  %v256_v39 = vmul.f32 %v670_v29, %v1073_v14  ;;  %v299_v40 = vmul.f32 %v683_v30, %v1075_v16  ;;  %v736_v61 = vld [vmem:[#allocation2 + $0x1b] sm:$0xff]  ;;  %v660_v4 = vld [vmem:[#allocation2 + $0x25] sm:$0xff]  ;;  %p881_p13 = por %p880_p12, %p879_p11 }
  0x47   : > { %v267_v37 = vadd.f32 %v255_v27, %v212_v26  ;;  %v427_v44 = vmul.f32 %v721_v21, %v1081_v22  ;;  %v470_v45 = vmul.f32 %v734_v23, %v1083_v24  ;;  %v342_v46 = vmul.f32 %v696_v31, %v1077_v18  ;;  %v685_v62 = vld [vmem:[#allocation2 + $0x1f] sm:$0xff]  ;;  %v686_v10 = vld [vmem:[#allocation2 + $0x27] sm:$0xff] }
  0x48   : > { %v214_v47 = vmul.f32 %v658_v41, %v1071_v13  ;;  %v268_v51 = vadd.f32 %v256_v39, %v213_v33  ;;  %v257_v52 = vmul.f32 %v671_v42, %v1073_v14  ;;  %v300_v53 = vmul.f32 %v684_v43, %v1075_v16  ;;  %v698_v3 = vld [vmem:[#allocation2 + $0x20] sm:$0xff]  ;;  %v699_v21 = vld [vmem:[#allocation2 + $0x28] sm:$0xff]  ;;  %p882_p0 = pnand %p881_p13, %p875_p10 }
  0x49   : > { %v310_v50 = vadd.f32 %v298_v28, %v267_v37  ;;  %v385_v57 = vmul.f32 %v709_v34, %v1079_v20  ;;  %v428_v58 = vmul.f32 %v722_v35, %v1081_v22  ;;  %v471_v59 = vmul.f32 %v735_v36, %v1083_v24  ;;  %v711_v19 = vld [vmem:[#allocation2 + $0x21] sm:$0xff]  ;;  %v712_v33 = vld [vmem:[#allocation2 + $0x29] sm:$0xff] }
  0x4a   : > { %v343_v60 = vmul.f32 %v697_v48, %v1077_v18  ;;  %v311_v0 = vadd.f32 %v299_v40, %v268_v51  ;;  %v269_v1 = vadd.f32 %v257_v52, %v214_v47  ;;  %v215_v2 = vmul.f32 %v659_v55, %v1071_v13  ;;  %v724_v26 = vld [vmem:[#allocation2 + $0x22] sm:$0xff]  ;;  %v661_v34 = vld [vmem:[#allocation2 + $0x2d] sm:$0xff] }
  0x4b   : > { %v353_v63 = vadd.f32 %v341_v32, %v310_v50  ;;  %v386_v5 = vmul.f32 %v710_v49, %v1079_v20  ;;  %v429_v6 = vmul.f32 %v723_v54, %v1081_v22  ;;  %v258_v7 = vmul.f32 %v672_v56, %v1073_v14  ;;  %v674_v39 = vld [vmem:[#allocation2 + $0x2e] sm:$0xff] }
  0x4c   : > { %v301_v8 = vmul.f32 %v685_v62, %v1075_v16  ;;  %v354_v12 = vadd.f32 %v342_v46, %v311_v0  ;;  %v312_v15 = vadd.f32 %v300_v53, %v269_v1  ;;  %v472_v17 = vmul.f32 %v736_v61, %v1083_v24  ;;  %v687_v40 = vld [vmem:[#allocation2 + $0x2f] sm:$0xff]  ;;  %v737_v46 = vld [vmem:[#allocation2 + $0x23] sm:$0xff] }
  0x4d   : > { %v396_v11 = vadd.f32 %v384_v38, %v353_v63  ;;  %v270_v23 = vadd.f32 %v258_v7, %v215_v2  ;;  %v344_v25 = vmul.f32 %v698_v3, %v1077_v18  ;;  %v216_v27 = vmul.f32 %v660_v4, %v1071_v13  ;;  %v725_v47 = vld [vmem:[#allocation2 + $0x2a] sm:$0xff]  ;;  %v726_v1 = vld [vmem:[#allocation2 + $0x32] sm:$0xff] }
  0x4e   : > { %v259_v28 = vmul.f32 %v673_v9, %v1073_v14  ;;  %v397_v30 = vadd.f32 %v385_v57, %v354_v12  ;;  %v355_v31 = vadd.f32 %v343_v60, %v312_v15  ;;  %v302_v32 = vmul.f32 %v686_v10, %v1075_v16  ;;  %v738_v51 = vld [vmem:[#allocation2 + $0x2b] sm:$0xff]  ;;  %v662_v57 = vld [vmem:[#allocation2 + $0x35] sm:$0xff]  ;;  %v663_v12 = vld [vmem:[#allocation2 + $0x3d] sm:$0xff] }
  0x4f   : > { %v439_v29 = vadd.f32 %v427_v44, %v396_v11  ;;  %v313_v35 = vadd.f32 %v301_v8, %v270_v23  ;;  %v387_v36 = vmul.f32 %v711_v19, %v1079_v20  ;;  %v345_v38 = vmul.f32 %v699_v21, %v1077_v18  ;;  %v700_v53 = vld [vmem:[#allocation2 + $0x30] sm:$0xff]  ;;  %v676_v15 = vld [vmem:[#allocation2 + $0x3e] sm:$0xff] }
  0x50   : > { %v271_v37 = vadd.f32 %v259_v28, %v216_v27  ;;  %v440_v42 = vadd.f32 %v428_v58, %v397_v30  ;;  %v398_v43 = vadd.f32 %v386_v5, %v355_v31  ;;  %v430_v44 = vmul.f32 %v724_v26, %v1081_v22  ;;  %v675_v58 = vld [vmem:[#allocation2 + $0x36] sm:$0xff]  ;;  %v689_v26 = vld [vmem:[#allocation2 + $0x3f] sm:$0xff] }
  0x51   : > { %v482_v41 = vadd.f32 %v470_v45, %v439_v29  ;;  %v356_v48 = vadd.f32 %v344_v25, %v313_v35  ;;  %v388_v50 = vmul.f32 %v712_v33, %v1079_v20  ;;  %v217_v52 = vmul.f32 %v661_v34, %v1071_v13  ;;  %v713_v0 = vld [vmem:[#allocation2 + $0x31] sm:$0xff]  ;;  %v714_v25 = vld [vmem:[#allocation2 + $0x39] sm:$0xff] }
  0x52   : > { %v314_v49 = vadd.f32 %v302_v32, %v271_v37  ;;  %v483_v54 = vadd.f32 %v471_v59, %v440_v42  ;;  %v441_v55 = vadd.f32 %v429_v6, %v398_v43  ;;  %v260_v45 = vmul.f32 %v674_v39, %v1073_v14  ;;  %v688_v2 = vld [vmem:[#allocation2 + $0x37] sm:$0xff]  ;;  %v702_v32 = vld [vmem:[#allocation2 + $0x40] sm:$0xff] }
  0x53   : > { %494 = vst [vmem:[%s1069_s5] sm:$0xff] %v482_v41  ;;  %v303_v56 = vmul.f32 %v687_v40, %v1075_v16  ;;  %v399_v60 = vadd.f32 %v387_v36, %v356_v48  ;;  %v473_v61 = vmul.f32 %v737_v46, %v1083_v24  ;;  %v431_v63 = vmul.f32 %v725_v47, %v1081_v22  ;;  %v701_v6 = vld [vmem:[#allocation2 + $0x38] sm:$0xff]  ;;  %v677_v39 = vld [vmem:[#allocation2 + $0x46] sm:$0xff] }
  0x54   : > { %v357_v62 = vadd.f32 %v345_v38, %v314_v49  ;;  %495 = vst [vmem:[%s1069_s5 + $0x8] sm:$0xff] %v483_v54  ;;  %v484_v3 = vadd.f32 %v472_v17, %v441_v55  ;;  %v474_v59 = vmul.f32 %v738_v51, %v1083_v24  ;;  %v272_v4 = vadd.f32 %v260_v45, %v217_v52  ;;  %v739_v9 = vld [vmem:[#allocation2 + $0x33] sm:$0xff]  ;;  %v740_v35 = vld [vmem:[#allocation2 + $0x3b] sm:$0xff]  ;;  %v664_v38 = vld [vmem:[#allocation2 + $0x45] sm:$0xff] }
  0x55   : > { %v346_v5 = vmul.f32 %v700_v53, %v1077_v18  ;;  %v442_v7 = vadd.f32 %v430_v44, %v399_v60  ;;  %v218_v10 = vmul.f32 %v662_v57, %v1071_v13  ;;  %v261_v11 = vmul.f32 %v675_v58, %v1073_v14  ;;  %v727_v31 = vld [vmem:[#allocation2 + $0x3a] sm:$0xff]  ;;  %v690_v46 = vld [vmem:[#allocation2 + $0x47] sm:$0xff] }
  0x56   : > { %v400_v8 = vadd.f32 %v388_v50, %v357_v62  ;;  %496 = vst [vmem:[%s1069_s5 + $0x10] sm:$0xff] %v484_v3  ;;  %v315_v19 = vadd.f32 %v303_v56, %v272_v4  ;;  %v389_v21 = vmul.f32 %v713_v0, %v1079_v20  ;;  %v432_v17 = vmul.f32 %v726_v1, %v1081_v22  ;;  %v715_v44 = vld [vmem:[#allocation2 + $0x41] sm:$0xff]  ;;  %v716_v56 = vld [vmem:[#allocation2 + $0x49] sm:$0xff] }
  0x57   : > { %v304_v23 = vmul.f32 %v688_v2, %v1075_v16  ;;  %v485_v27 = vadd.f32 %v473_v61, %v442_v7  ;;  %v273_v29 = vadd.f32 %v261_v11, %v218_v10  ;;  %v347_v30 = vmul.f32 %v701_v6, %v1077_v18  ;;  %v728_v51 = vld [vmem:[#allocation2 + $0x42] sm:$0xff]  ;;  %v665_v57 = vld [vmem:[#allocation2 + $0x4d] sm:$0xff] }
  0x58   : > { %v443_v28 = vadd.f32 %v431_v63, %v400_v8  ;;  %v358_v33 = vadd.f32 %v346_v5, %v315_v19  ;;  %v475_v34 = vmul.f32 %v739_v9, %v1083_v24  ;;  %v219_v36 = vmul.f32 %v663_v12, %v1071_v13  ;;  %v703_v52 = vld [vmem:[#allocation2 + $0x48] sm:$0xff]  ;;  %v704_v10 = vld [vmem:[#allocation2 + $0x50] sm:$0xff] }
  0x59   : > { %v262_v37 = vmul.f32 %v676_v15, %v1073_v14  ;;  %497 = vst [vmem:[%s1069_s5 + $0x18] sm:$0xff] %v485_v27  ;;  %v316_v41 = vadd.f32 %v304_v23, %v273_v29  ;;  %v390_v42 = vmul.f32 %v714_v25, %v1079_v20  ;;  %v305_v43 = vmul.f32 %v689_v26, %v1075_v16  ;;  %v678_v63 = vld [vmem:[#allocation2 + $0x4e] sm:$0xff]  ;;  %v741_v3 = vld [vmem:[#allocation2 + $0x43] sm:$0xff]  ;;  %v692_v23 = vld [vmem:[#allocation2 + $0x57] sm:$0xff] }
  0x5a   : > { %v486_v40 = vadd.f32 %v474_v59, %v443_v28  ;;  %v401_v47 = vadd.f32 %v389_v21, %v358_v33  ;;  %v433_v48 = vmul.f32 %v727_v31, %v1081_v22  ;;  %v348_v50 = vmul.f32 %v702_v32, %v1077_v18  ;;  %v691_v0 = vld [vmem:[#allocation2 + $0x4f] sm:$0xff] }
  0x5b   : > { %v274_v49 = vadd.f32 %v262_v37, %v219_v36  ;;  %v359_v53 = vadd.f32 %v347_v30, %v316_v41  ;;  %v476_v54 = vmul.f32 %v740_v35, %v1083_v24  ;;  %v220_v55 = vmul.f32 %v664_v38, %v1071_v13  ;;  %v729_v5 = vld [vmem:[#allocation2 + $0x4a] sm:$0xff]  ;;  %v666_v21 = vld [vmem:[#allocation2 + $0x55] sm:$0xff]  ;;  %v680_v41 = vld [vmem:[#allocation2 + $0x5e] sm:$0xff] }
  0x5c   : > { %498 = vst [vmem:[%s1069_s5 + $0x20] sm:$0xff] %v486_v40  ;;  %v263_v45 = vmul.f32 %v677_v39, %v1073_v14  ;;  %v444_v58 = vadd.f32 %v432_v17, %v401_v47  ;;  %v391_v61 = vmul.f32 %v715_v44, %v1079_v20  ;;  %v306_v62 = vmul.f32 %v690_v46, %v1075_v16  ;;  %v679_v17 = vld [vmem:[#allocation2 + $0x56] sm:$0xff]  ;;  %v742_v28 = vld [vmem:[#allocation2 + $0x4b] sm:$0xff] }
  0x5d   : > { %v317_v60 = vadd.f32 %v305_v43, %v274_v49  ;;  %v402_v1 = vadd.f32 %v390_v42, %v359_v53  ;;  %v434_v2 = vmul.f32 %v728_v51, %v1081_v22  ;;  %v349_v4 = vmul.f32 %v703_v52, %v1077_v18  ;;  %v717_v29 = vld [vmem:[#allocation2 + $0x51] sm:$0xff]  ;;  %v667_v40 = vld [vmem:[#allocation2 + $0x5d] sm:$0xff] }
  0x5e   : > { %v275_v59 = vadd.f32 %v263_v45, %v220_v55  ;;  %v487_v6 = vadd.f32 %v475_v34, %v444_v58  ;;  %v392_v8 = vmul.f32 %v716_v56, %v1079_v20  ;;  %v221_v9 = vmul.f32 %v665_v57, %v1071_v13  ;;  %v730_v34 = vld [vmem:[#allocation2 + $0x52] sm:$0xff]  ;;  %v693_v49 = vld [vmem:[#allocation2 + $0x5f] sm:$0xff] }
  0x5f   : > { %v360_v7 = vadd.f32 %v348_v50, %v317_v60  ;;  %v445_v11 = vadd.f32 %v433_v48, %v402_v1  ;;  %v264_v15 = vmul.f32 %v678_v63, %v1073_v14  ;;  %v307_v19 = vmul.f32 %v691_v0, %v1075_v16  ;;  %v705_v35 = vld [vmem:[#allocation2 + $0x58] sm:$0xff]  ;;  %v719_v0 = vld [vmem:[#allocation2 + $0x61] sm:$0xff] }
  0x60   : > { %v318_v12 = vadd.f32 %v306_v62, %v275_v59  ;;  %499 = vst [vmem:[%s1069_s5 + $0x28] sm:$0xff] %v487_v6  ;;  %v477_v26 = vmul.f32 %v741_v3, %v1083_v24  ;;  %v435_v27 = vmul.f32 %v729_v5, %v1081_v22  ;;  %v350_v33 = vmul.f32 %v704_v10, %v1077_v18  ;;  %v743_v47 = vld [vmem:[#allocation2 + $0x53] sm:$0xff]  ;;  %v744_v3 = vld [vmem:[#allocation2 + $0x5b] sm:$0xff]  ;;  %v745_v10 = vld [vmem:[#allocation2 + $0x63] sm:$0xff] }
  0x61   : > { %v403_v25 = vadd.f32 %v391_v61, %v360_v7  ;;  %v488_v30 = vadd.f32 %v476_v54, %v445_v11  ;;  %v276_v32 = vadd.f32 %v264_v15, %v221_v9  ;;  %v222_v37 = vmul.f32 %v666_v21, %v1071_v13  ;;  %v718_v48 = vld [vmem:[#allocation2 + $0x59] sm:$0xff] }
  0x62   : > { %v361_v31 = vadd.f32 %v349_v4, %v318_v12  ;;  %v265_v38 = vmul.f32 %v679_v17, %v1073_v14  ;;  %v308_v39 = vmul.f32 %v692_v23, %v1075_v16  ;;  %v478_v43 = vmul.f32 %v742_v28, %v1083_v24  ;;  %v706_v54 = vld [vmem:[#allocation2 + $0x60] sm:$0xff] }
  0x63   : > { %v446_v36 = vadd.f32 %v434_v2, %v403_v25  ;;  %500 = vst [vmem:[%s1069_s5 + $0x30] sm:$0xff] %v488_v30  ;;  %v319_v44 = vadd.f32 %v307_v19, %v276_v32  ;;  %v393_v46 = vmul.f32 %v717_v29, %v1079_v20  ;;  %v436_v51 = vmul.f32 %v730_v34, %v1081_v22  ;;  %v731_v56 = vld [vmem:[#allocation2 + $0x5a] sm:$0xff] }
  0x64   : > { %v404_v42 = vadd.f32 %v392_v8, %v361_v31  ;;  %v277_v52 = vadd.f32 %v265_v38, %v222_v37  ;;  %v351_v53 = vmul.f32 %v705_v35, %v1077_v18  ;;  %v223_v57 = vmul.f32 %v667_v40, %v1071_v13 }
  0x65   : > { %v489_v50 = vadd.f32 %v477_v26, %v446_v36  ;;  %v362_v45 = vadd.f32 %v350_v33, %v319_v44  ;;  %v266_v58 = vmul.f32 %v680_v41, %v1073_v14  ;;  %v479_v60 = vmul.f32 %v743_v47, %v1083_v24  ;;  %v732_v14 = vld [vmem:[#allocation2 + $0x62] sm:$0xff] }
  0x66   : > { %v447_v55 = vadd.f32 %v435_v27, %v404_v42  ;;  %v320_v61 = vadd.f32 %v308_v39, %v277_v52  ;;  %v394_v62 = vmul.f32 %v718_v48, %v1079_v20  ;;  %v309_v63 = vmul.f32 %v693_v49, %v1075_v16 }
  0x67   : > { %501 = vst [vmem:[%s1069_s5 + $0x38] sm:$0xff] %v489_v50  ;;  %v405_v2 = vadd.f32 %v393_v46, %v362_v45  ;;  %v278_v59 = vadd.f32 %v266_v58, %v223_v57  ;;  %v352_v4 = vmul.f32 %v706_v54, %v1077_v18  ;;  %v437_v5 = vmul.f32 %v731_v56, %v1081_v22 }
  0x68   : > { %v490_v1 = vadd.f32 %v478_v43, %v447_v55  ;;  %v363_v13 = vadd.f32 %v351_v53, %v320_v61  ;;  %v395_v16 = vmul.f32 %v719_v0, %v1079_v20  ;;  %v480_v9 = vmul.f32 %v744_v3, %v1083_v24 }
  0x69   : > { %v448_v6 = vadd.f32 %v436_v51, %v405_v2  ;;  %v321_v7 = vadd.f32 %v309_v63, %v278_v59  ;;  %v438_v12 = vmul.f32 %v732_v14, %v1081_v22  ;;  %v481_v21 = vmul.f32 %v745_v10, %v1083_v24 }
  0x6a   : > { %502 = vst [vmem:[%s1069_s5 + $0x40] sm:$0xff] %v490_v1  ;;  %v406_v8 = vadd.f32 %v394_v62, %v363_v13 }
  0x6b   : > { %v491_v11 = vadd.f32 %v479_v60, %v448_v6  ;;  %v364_v18 = vadd.f32 %v352_v4, %v321_v7 }
  0x6c   : > { %v449_v15 = vadd.f32 %v437_v5, %v406_v8 }
  0x6d   : > { %503 = vst [vmem:[%s1069_s5 + $0x48] sm:$0xff] %v491_v11  ;;  %v407_v19 = vadd.f32 %v395_v16, %v364_v18 }
  0x6e   : > { %v492_v17 = vadd.f32 %v480_v9, %v449_v15 }
  0x6f   : > { %v450_v23 = vadd.f32 %v438_v12, %v407_v19 }
  0x70   : > { %504 = vst [vmem:[%s1069_s5 + $0x50] sm:$0xff] %v492_v17 }
  0x71   : > { %v493_v20 = vadd.f32 %v481_v21, %v450_v23 }
  0x73   : > { %505 = vst [vmem:[%s1069_s5 + $0x58] sm:$0xff] %v493_v20 }
  0x74   : > { %885 = shalt.err (!%p882_p0)
}
  0x75   : > { %s886_s30 = scalar_lea.hbm %s1186_s8, 1536  ;;  %s890_s24 = scalar_lea.hbm %s1240_s2, 3072 }
  0x76   : > { %p887_p1 = scmp.ne.s32.totalorder %s1186_s8, %s886_s30  ;;  %p891_p5 = scmp.lt.s32.totalorder %s1186_s8, %s1240_s2 }
  0x77   : > { %p892_p6 = scmp.lt.s32.totalorder %s890_s24, %s886_s30 }
  0x78   : > { %p888_p2 = pnand %p887_p1, %p1018_p4 }
  0x79   : > { %p893_p7 = por %p892_p6, %p891_p5 }
  0x7a   : > { %p889_p3 = pneg %p888_p2 }
  0x7c   : > { %p894_p9 = pnand %p893_p7, %p889_p3 }
  0x7e   : > { %897 = shalt.err (!%p894_p9)
}
  0x7f   : > { %s961_s27 = smov 128   ;;  %s962_s28 = smov 8  }
  0x80   : > { %758 = dma.vmem_to_hbm [thread:$0]  (%p1018_p4), %s1188_s4, 1536, %s1186_s8, %s1193_s15, %s961_s27, %s961_s27, %s962_s28  }
  0x81 PF: > { %p770_p10 = scmp.ge.s32.totalorder %s954_s14, 2  ;;  %s538_s29 = sand.u32 1, %s934_s9  }
  0x82   : > { %s539_s5 = scalar_lea.sflag [#allocation6], %s538_s29 }
  0x83   : > { %p765_p11 = pnand %p770_p10, %p1025_p8 }
  0x85   : > { %p766_p12 = pneg %p765_p11 }
  0x87   : > { %929 = dma.done.wait (%p766_p12), %s539_s5, 1536  }
  0x88   : > { %931 = vsyncadd (%p766_p12), %s539_s5, 4294965760  ;;  %s16_s14 = sadd.s32 1, %s954_s14   ;;  %s1245_s9 = smov %s938_s10 }
  0x89   : > { %p13_p13 = scmp.ge.s32.totalorder %s16_s14, 4   ;;  %s1246_s10 = smov %s942_s11 }
  0x8a   : > { %s1247_s11 = smov %s1031_s22  ;;  %s1248_s12 = smov %s950_s13 }
  0x8b   : > { %s1249_s13 = smov %s1251_s17  ;;  %15 = sbr.rel (!%p13_p13) target bundleno = 5 (0x5), region = 82 }
  0x90   :  { %544 = vsyncpa [#allocation5], 1 }
  0x91   :  { %546 = vsyncpa [#allocation5 + $0x1], 1 }
  0x92   :  { %547 = vsyncpa [#allocation6], 1 }
  0x93   :  { %549 = vsyncpa [#allocation6 + $0x1], 1 }
  0x94   :  { %550 = vsyncmov [#allocation3] }
  0x97   :  { %s551_s19 = vpop.sfrf %550 }
  0x98   :  { %p749_p4 = scmp.ne.s32.totalorder %s551_s19, 0 }
  0x9a   :  { %555 = shalt.err (%p749_p4)  }
  0x9b   :  { %557 = vsyncmov [#allocation3 + $0x1] }
  0x9e   :  { %s558_s21 = vpop.sfrf %557 }
  0x9f   :  { %p750_p8 = scmp.ne.s32.totalorder %s558_s21, 0 }
  0xa1   :  { %562 = shalt.err (%p750_p8)  }

</bundles_post_ra>
